<compile_context>
chip_gen: v5e
topology: v5e:2x2
jax: 0.10.0
libtpu: 0.0.40
codegen_flags: <defaults>
</compile_context>

<pallas_src>
import jax
import jax.numpy as jnp
import numpy as np
from jax.experimental import pallas as pl
from jax.experimental.pallas import tpu as pltpu


def crossnet_mix_kernel(x_ref, vcat_ref, cbd_ref, ust_ref, wgt_ref, exp_ref,
                        bias_ref, out_ref):
    x0 = x_ref[...].astype(jnp.float32)      # (TB, Dp)  lane-dense activations
    wg_t = wgt_ref[...]                      # (Dp, E)   f32 gate weights (tiny)
    expand = exp_ref[...]                    # (E, ER)   f32 gate lane-expansion

    n_cross = vcat_ref.shape[0]

    def one_layer(xi, v_cat, c_bd, u_st, b_i):
        # --- gating: all experts in one small f32 matmul, exact softmax so
        #     sum_e gate_e == 1 and the bias can be pulled out of the sum ---
        scores = jnp.dot(xi, wg_t, preferred_element_type=jnp.float32)   # (TB, E)
        scores = scores - jnp.max(scores, axis=-1, keepdims=True)
        es = jnp.exp(scores)
        gate = es / jnp.sum(es, axis=-1, keepdims=True)                  # (TB, E)
        # gate_lanes[b, e*R + r] = gate[b, e]  (MXU op, no repeat/reshape relayout)
        gate_lanes = jnp.dot(gate, expand, preferred_element_type=jnp.float32)

        # --- all experts fused into three bf16 matmuls (f32 accumulation) ---
        xi_bf = xi.astype(jnp.bfloat16)
        v = jnp.tanh(jnp.dot(xi_bf, v_cat, preferred_element_type=jnp.float32))
        v = jnp.tanh(jnp.dot(v.astype(jnp.bfloat16), c_bd,
                             preferred_element_type=jnp.float32))
        vg = (v * gate_lanes).astype(jnp.bfloat16)
        # sum_e gate_e * (v_e @ U_e^T) in one matmul.
        combined = jnp.dot(vg, u_st, preferred_element_type=jnp.float32)  # (TB, Dp)
        # Gates sum to 1 (exact softmax), so bias is added once.
        return x0 * (combined + b_i) + xi

    if n_cross <= 4:
        # Small stacks: unroll; per-layer ref loads keep weight live ranges short.
        xi = x0
        for i in range(n_cross):
            xi = one_layer(xi, vcat_ref[i], cbd_ref[i], ust_ref[i],
                           bias_ref[i:i + 1, :])
    else:
        # Deep stacks: fori_loop so only one layer's weights are live at a time.
        def body(i, xi):
            return one_layer(xi, vcat_ref[i], cbd_ref[i], ust_ref[i],
                             bias_ref[pl.ds(i, 1), :])
        xi = jax.lax.fori_loop(0, n_cross, body, x0)

    out_ref[...] = xi.astype(out_ref.dtype)


def _pick_tile_b(batch):
    """Large batch tile (amortizes ~0.35us/grid-step overhead), multiple of 8
    (sublane), capped so the grid has >= 2 blocks whenever possible (both v7x
    TensorCores active) and at 2048 rows (VMEM budget for intermediates)."""
    b8 = max(8, -(-batch // 8) * 8)
    if b8 <= 8:
        return b8
    half = -(-(b8 // 2) // 8) * 8
    return max(8, min(2048, half))


def crossnet_mix(x, U, V, C, Wg, bias):
    """x: (B, D); U,V: (L,E,D,R); C: (L,E,R,R); Wg: (E,D); bias: (L,D)."""
    B, D = x.shape
    L, E, _, R = U.shape
    ER = E * R

    # ---- weight-layout prep (plain XLA, outside the kernel) ----
    # v_cat[l, d, e*R+r] = V[l, e, d, r]        (experts concatenated along lanes)
    v_cat = jnp.transpose(V, (0, 2, 1, 3)).reshape(L, D, ER)
    # u_st[l, e*R+r, d]  = U[l, e, d, r]        (stacked + pre-transposed U)
    u_st = jnp.transpose(U, (0, 1, 3, 2)).reshape(L, ER, D)
    # Block-diagonal C: c_bd[l, e*R+i, f*R+j] = delta(e,f) * C[l, e, i, j].
    # TODO(synk): for ER >= 256 switch to per-expert (TB,R)@(R,R) dots instead
    # of the block-diagonal form (Ex wasted MACs / VMEM at large configs).
    eye_e = jnp.eye(E, dtype=C.dtype)
    c_bd = (C[:, :, :, None, :] * eye_e[None, :, None, :, None]).reshape(L, ER, ER)
    wg_t = jnp.transpose(Wg)                                       # (D, E)
    expand = jnp.repeat(jnp.eye(E, dtype=jnp.float32), R, axis=1)  # (E, ER)

    # Lane-dense feature dim: zero-pad D up to a multiple of 128.  Exact:
    # padded xi columns stay identically zero through every layer.
    Dp = max(128, -(-D // 128) * 128)
    pad_d = Dp - D
    x_p, bias_p = x, bias
    if pad_d:
        x_p = jnp.pad(x_p, ((0, 0), (0, pad_d)))
        bias_p = jnp.pad(bias_p, ((0, 0), (0, pad_d)))
        v_cat = jnp.pad(v_cat, ((0, 0), (0, pad_d), (0, 0)))
        u_st = jnp.pad(u_st, ((0, 0), (0, 0), (0, pad_d)))
        wg_t = jnp.pad(wg_t, ((0, pad_d), (0, 0)))

    # Heavy expert weights -> bf16 once (no in-kernel upcast, bf16 MXU, half the
    # resident VMEM).  Tiny gating weights stay f32 for exact gate / bias math.
    v_cat = v_cat.astype(jnp.bfloat16)
    c_bd = c_bd.astype(jnp.bfloat16)
    u_st = u_st.astype(jnp.bfloat16)
    wg_t = wg_t.astype(jnp.float32)
    expand = expand.astype(jnp.float32)
    bias_p = bias_p.astype(jnp.float32)

    # ---- batch tiling: big tiles on a cdiv grid, padded tail ----
    tile_b = _pick_tile_b(B)
    n_blocks = pl.cdiv(B, tile_b)
    B_pad = n_blocks * tile_b
    if B_pad != B:
        x_p = jnp.pad(x_p, ((0, B_pad - B), (0, 0)))

    # Explicit VMEM budget: resident weights + double-buffered activation tiles
    # + f32 intermediate headroom, clamped well inside v7x's 64 MiB physical.
    weight_bytes = (v_cat.size + c_bd.size + u_st.size) * 2 \
        + (wg_t.size + expand.size + bias_p.size) * 4
    act_bytes = 4 * tile_b * Dp * 4 + 8 * tile_b * max(Dp, ER) * 4
    vmem_limit = int(min(48 * 1024 * 1024,
                         max(24 * 1024 * 1024, 2 * (weight_bytes + act_bytes))))

    out_padded = pl.pallas_call(
        crossnet_mix_kernel,
        out_shape=jax.ShapeDtypeStruct((B_pad, Dp), x.dtype),
        grid_spec=pltpu.PrefetchScalarGridSpec(
            num_scalar_prefetch=0,
            grid=(n_blocks,),
            in_specs=[
                pl.BlockSpec((tile_b, Dp), lambda b: (b, 0)),     # x (batch-tiled)
                pl.BlockSpec((L, Dp, ER), lambda b: (0, 0, 0)),   # V_cat   (resident)
                pl.BlockSpec((L, ER, ER), lambda b: (0, 0, 0)),   # C block-diag
                pl.BlockSpec((L, ER, Dp), lambda b: (0, 0, 0)),   # U stacked^T
                pl.BlockSpec((Dp, E), lambda b: (0, 0)),          # Wg^T (f32)
                pl.BlockSpec((E, ER), lambda b: (0, 0)),          # gate expansion
                pl.BlockSpec((L, Dp), lambda b: (0, 0)),          # bias
            ],
            out_specs=pl.BlockSpec((tile_b, Dp), lambda b: (b, 0)),
        ),
        compiler_params=pltpu.CompilerParams(
            dimension_semantics=("parallel",),
            vmem_limit_bytes=vmem_limit,
        ),
    )(x_p, v_cat, c_bd, u_st, wg_t, expand, bias_p)

    return out_padded[:B, :D]


def crossnet_mix_ref(x, U, V, C, Wg, bias):
    """Pure-JAX f32 reference mirroring the PyTorch per-expert forward."""
    x0 = x.astype(jnp.float32)
    xi = x0
    n_cross, n_experts = U.shape[0], U.shape[1]
    for i in range(n_cross):
        outs, gates = [], []
        for e in range(n_experts):
            gates.append(xi @ Wg[e])                          # (B,)
            v = jnp.tanh(xi @ V[i, e])
            v = jnp.tanh(v @ C[i, e])
            uv = v @ U[i, e].T
            outs.append(x0 * (uv + bias[i]))
        outs = jnp.stack(outs, axis=2)                        # (B, D, E)
        g = jax.nn.softmax(jnp.stack(gates, axis=1), axis=1)  # (B, E)
        moe = jnp.einsum("bde,be->bd", outs, g)
        xi = moe + xi
    return xi.astype(x.dtype)


if __name__ == "__main__":
    # Module defaults: low_rank=32, n_experts=4, n_cross=2 -> E*R = 128 (lane-dense).
    B, d_in, low_rank, n_experts, n_cross = 8, 32, 32, 4, 2

    key = jax.random.PRNGKey(0)
    k_x, k_u, k_v, k_c, k_g = jax.random.split(key, 5)

    def xavier(k, shape, fan_in, fan_out):
        std = float(np.sqrt(2.0 / (fan_in + fan_out)))
        return jax.random.normal(k, shape, dtype=jnp.float32) * std

    x = jax.random.normal(k_x, (B, d_in), dtype=jnp.float32)
    U = xavier(k_u, (n_cross, n_experts, d_in, low_rank), d_in, low_rank)
    V = xavier(k_v, (n_cross, n_experts, d_in, low_rank), d_in, low_rank)
    C = xavier(k_c, (n_cross, n_experts, low_rank, low_rank), low_rank, low_rank)
    Wg = xavier(k_g, (n_experts, d_in), d_in, 1)             # gating Linear weights
    bias = jnp.zeros((n_cross, d_in), dtype=jnp.float32)     # torch.zeros(d_in) init

    out = crossnet_mix(x, U, V, C, Wg, bias)
    out = jax.block_until_ready(out)

    ref = crossnet_mix_ref(x, U, V, C, Wg, bias)
    # Tolerance covers bf16 expert-path matmuls (f32 accumulation); the gating
    # path and residual stay f32.
    np.testing.assert_allclose(np.asarray(out), np.asarray(ref), rtol=2e-2, atol=2e-2)

    print("KERNEL_OK")
</pallas_src>

<mosaic_0001>
module attributes {stable_mosaic.version = 11 : i64} {
  func.func @crossnet_mix_kernel(%arg0: i32, %arg1: memref<8x128xf32, #tpu.memory_space<vmem>>, %arg2: memref<2x128x128xbf16, #tpu.memory_space<vmem>>, %arg3: memref<2x128x128xbf16, #tpu.memory_space<vmem>>, %arg4: memref<2x128x128xbf16, #tpu.memory_space<vmem>>, %arg5: memref<128x4xf32, #tpu.memory_space<vmem>>, %arg6: memref<4x128xf32, #tpu.memory_space<vmem>>, %arg7: memref<2x128xf32, #tpu.memory_space<vmem>>, %arg8: memref<8x128xf32, #tpu.memory_space<vmem>>) attributes {dimension_semantics = [#tpu.dimension_semantics<parallel>], iteration_bounds = array<i64: 1>, scalar_prefetch = 0 : i64, scratch_operands = 0 : i64, tpu.core_type = #tpu.core_type<tc>, window_params = [{transform_indices = @transform_0, window_bounds = array<i64: 8, 128>}, {pipeline_mode = #tpu.pipeline_mode<synchronous>, transform_indices = @transform_1, window_bounds = array<i64: 2, 128, 128>}, {pipeline_mode = #tpu.pipeline_mode<synchronous>, transform_indices = @transform_2, window_bounds = array<i64: 2, 128, 128>}, {pipeline_mode = #tpu.pipeline_mode<synchronous>, transform_indices = @transform_3, window_bounds = array<i64: 2, 128, 128>}, {pipeline_mode = #tpu.pipeline_mode<synchronous>, transform_indices = @transform_4, window_bounds = array<i64: 128, 4>}, {pipeline_mode = #tpu.pipeline_mode<synchronous>, transform_indices = @transform_5, window_bounds = array<i64: 4, 128>}, {pipeline_mode = #tpu.pipeline_mode<synchronous>, transform_indices = @transform_6, window_bounds = array<i64: 2, 128>}, {transform_indices = @transform_7, window_bounds = array<i64: 8, 128>}]} {
    %c0 = arith.constant 0 : index
    %c0_0 = arith.constant 0 : index
    %0 = vector.load %arg1[%c0, %c0_0] : memref<8x128xf32, #tpu.memory_space<vmem>>, vector<8x128xf32>
    %c0_1 = arith.constant 0 : index
    %c0_2 = arith.constant 0 : index
    %1 = vector.load %arg5[%c0_1, %c0_2] : memref<128x4xf32, #tpu.memory_space<vmem>>, vector<128x4xf32>
    %c0_3 = arith.constant 0 : index
    %c0_4 = arith.constant 0 : index
    %2 = vector.load %arg6[%c0_3, %c0_4] : memref<4x128xf32, #tpu.memory_space<vmem>>, vector<4x128xf32>
    %c0_5 = arith.constant 0 : index
    %c0_6 = arith.constant 0 : index
    %c0_7 = arith.constant 0 : index
    %3 = vector.load %arg2[%c0_5, %c0_6, %c0_7] : memref<2x128x128xbf16, #tpu.memory_space<vmem>>, vector<1x128x128xbf16>
    %4 = vector.shape_cast %3 : vector<1x128x128xbf16> to vector<128x128xbf16>
    %c0_8 = arith.constant 0 : index
    %c0_9 = arith.constant 0 : index
    %c0_10 = arith.constant 0 : index
    %5 = vector.load %arg3[%c0_8, %c0_9, %c0_10] : memref<2x128x128xbf16, #tpu.memory_space<vmem>>, vector<1x128x128xbf16>
    %6 = vector.shape_cast %5 : vector<1x128x128xbf16> to vector<128x128xbf16>
    %c0_11 = arith.constant 0 : index
    %c0_12 = arith.constant 0 : index
    %c0_13 = arith.constant 0 : index
    %7 = vector.load %arg4[%c0_11, %c0_12, %c0_13] : memref<2x128x128xbf16, #tpu.memory_space<vmem>>, vector<1x128x128xbf16>
    %8 = vector.shape_cast %7 : vector<1x128x128xbf16> to vector<128x128xbf16>
    %c0_14 = arith.constant 0 : index
    %c0_15 = arith.constant 0 : index
    %9 = vector.load %arg7[%c0_14, %c0_15] : memref<2x128xf32, #tpu.memory_space<vmem>>, vector<1x128xf32>
    %cst = arith.constant dense<0.000000e+00> : vector<8x4xf32>
    %10 = tpu.matmul %0, %1, %cst {dimension_numbers = #tpu.dot_dimension_numbers<[1], [0], [0], [1], [0, 0, 1, 1], [], []>} : vector<8x128xf32>, vector<128x4xf32>, vector<8x4xf32> -> vector<8x4xf32>
    %cst_16 = arith.constant dense<0xFF800000> : vector<8xf32>
    %11 = vector.multi_reduction <maximumf>, %10, %cst_16 [1] : vector<8x4xf32> to vector<8xf32>
    %12 = vector.shape_cast %11 : vector<8xf32> to vector<8x1xf32>
    %13 = vector.broadcast %12 : vector<8x1xf32> to vector<8x4xf32>
    %14 = arith.subf %10, %13 : vector<8x4xf32>
    %15 = math.exp %14 : vector<8x4xf32>
    %cst_17 = arith.constant dense<0.000000e+00> : vector<8xf32>
    %16 = vector.multi_reduction <add>, %15, %cst_17 [1] : vector<8x4xf32> to vector<8xf32>
    %17 = vector.shape_cast %16 : vector<8xf32> to vector<8x1xf32>
    %18 = vector.broadcast %17 : vector<8x1xf32> to vector<8x4xf32>
    %19 = arith.divf %15, %18 : vector<8x4xf32>
    %cst_18 = arith.constant dense<0.000000e+00> : vector<8x128xf32>
    %20 = tpu.matmul %19, %2, %cst_18 {dimension_numbers = #tpu.dot_dimension_numbers<[1], [0], [0], [1], [0, 0, 1, 1], [], []>} : vector<8x4xf32>, vector<4x128xf32>, vector<8x128xf32> -> vector<8x128xf32>
    %21 = arith.truncf %0 : vector<8x128xf32> to vector<8x128xbf16>
    %cst_19 = arith.constant dense<0.000000e+00> : vector<8x128xf32>
    %22 = tpu.matmul %21, %4, %cst_19 {dimension_numbers = #tpu.dot_dimension_numbers<[1], [0], [0], [1], [0, 0, 1, 1], [], []>} : vector<8x128xbf16>, vector<128x128xbf16>, vector<8x128xf32> -> vector<8x128xf32>
    %23 = math.tanh %22 : vector<8x128xf32>
    %24 = arith.truncf %23 : vector<8x128xf32> to vector<8x128xbf16>
    %cst_20 = arith.constant dense<0.000000e+00> : vector<8x128xf32>
    %25 = tpu.matmul %24, %6, %cst_20 {dimension_numbers = #tpu.dot_dimension_numbers<[1], [0], [0], [1], [0, 0, 1, 1], [], []>} : vector<8x128xbf16>, vector<128x128xbf16>, vector<8x128xf32> -> vector<8x128xf32>
    %26 = math.tanh %25 : vector<8x128xf32>
    %27 = arith.mulf %26, %20 : vector<8x128xf32>
    %28 = arith.truncf %27 : vector<8x128xf32> to vector<8x128xbf16>
    %cst_21 = arith.constant dense<0.000000e+00> : vector<8x128xf32>
    %29 = tpu.matmul %28, %8, %cst_21 {dimension_numbers = #tpu.dot_dimension_numbers<[1], [0], [0], [1], [0, 0, 1, 1], [], []>} : vector<8x128xbf16>, vector<128x128xbf16>, vector<8x128xf32> -> vector<8x128xf32>
    %30 = vector.broadcast %9 : vector<1x128xf32> to vector<8x128xf32>
    %31 = arith.addf %29, %30 : vector<8x128xf32>
    %32 = arith.mulf %0, %31 : vector<8x128xf32>
    %33 = arith.addf %32, %0 : vector<8x128xf32>
    %c1 = arith.constant 1 : index
    %c0_22 = arith.constant 0 : index
    %c0_23 = arith.constant 0 : index
    %34 = vector.load %arg2[%c1, %c0_22, %c0_23] : memref<2x128x128xbf16, #tpu.memory_space<vmem>>, vector<1x128x128xbf16>
    %35 = vector.shape_cast %34 : vector<1x128x128xbf16> to vector<128x128xbf16>
    %c1_24 = arith.constant 1 : index
    %c0_25 = arith.constant 0 : index
    %c0_26 = arith.constant 0 : index
    %36 = vector.load %arg3[%c1_24, %c0_25, %c0_26] : memref<2x128x128xbf16, #tpu.memory_space<vmem>>, vector<1x128x128xbf16>
    %37 = vector.shape_cast %36 : vector<1x128x128xbf16> to vector<128x128xbf16>
    %c1_27 = arith.constant 1 : index
    %c0_28 = arith.constant 0 : index
    %c0_29 = arith.constant 0 : index
    %38 = vector.load %arg4[%c1_27, %c0_28, %c0_29] : memref<2x128x128xbf16, #tpu.memory_space<vmem>>, vector<1x128x128xbf16>
    %39 = vector.shape_cast %38 : vector<1x128x128xbf16> to vector<128x128xbf16>
    %c1_30 = arith.constant 1 : index
    %c0_31 = arith.constant 0 : index
    %40 = vector.load %arg7[%c1_30, %c0_31] : memref<2x128xf32, #tpu.memory_space<vmem>>, vector<1x128xf32>
    %cst_32 = arith.constant dense<0.000000e+00> : vector<8x4xf32>
    %41 = tpu.matmul %33, %1, %cst_32 {dimension_numbers = #tpu.dot_dimension_numbers<[1], [0], [0], [1], [0, 0, 1, 1], [], []>} : vector<8x128xf32>, vector<128x4xf32>, vector<8x4xf32> -> vector<8x4xf32>
    %cst_33 = arith.constant dense<0xFF800000> : vector<8xf32>
    %42 = vector.multi_reduction <maximumf>, %41, %cst_33 [1] : vector<8x4xf32> to vector<8xf32>
    %43 = vector.shape_cast %42 : vector<8xf32> to vector<8x1xf32>
    %44 = vector.broadcast %43 : vector<8x1xf32> to vector<8x4xf32>
    %45 = arith.subf %41, %44 : vector<8x4xf32>
    %46 = math.exp %45 : vector<8x4xf32>
    %cst_34 = arith.constant dense<0.000000e+00> : vector<8xf32>
    %47 = vector.multi_reduction <add>, %46, %cst_34 [1] : vector<8x4xf32> to vector<8xf32>
    %48 = vector.shape_cast %47 : vector<8xf32> to vector<8x1xf32>
    %49 = vector.broadcast %48 : vector<8x1xf32> to vector<8x4xf32>
    %50 = arith.divf %46, %49 : vector<8x4xf32>
    %cst_35 = arith.constant dense<0.000000e+00> : vector<8x128xf32>
    %51 = tpu.matmul %50, %2, %cst_35 {dimension_numbers = #tpu.dot_dimension_numbers<[1], [0], [0], [1], [0, 0, 1, 1], [], []>} : vector<8x4xf32>, vector<4x128xf32>, vector<8x128xf32> -> vector<8x128xf32>
    %52 = arith.truncf %33 : vector<8x128xf32> to vector<8x128xbf16>
    %cst_36 = arith.constant dense<0.000000e+00> : vector<8x128xf32>
    %53 = tpu.matmul %52, %35, %cst_36 {dimension_numbers = #tpu.dot_dimension_numbers<[1], [0], [0], [1], [0, 0, 1, 1], [], []>} : vector<8x128xbf16>, vector<128x128xbf16>, vector<8x128xf32> -> vector<8x128xf32>
    %54 = math.tanh %53 : vector<8x128xf32>
    %55 = arith.truncf %54 : vector<8x128xf32> to vector<8x128xbf16>
    %cst_37 = arith.constant dense<0.000000e+00> : vector<8x128xf32>
    %56 = tpu.matmul %55, %37, %cst_37 {dimension_numbers = #tpu.dot_dimension_numbers<[1], [0], [0], [1], [0, 0, 1, 1], [], []>} : vector<8x128xbf16>, vector<128x128xbf16>, vector<8x128xf32> -> vector<8x128xf32>
    %57 = math.tanh %56 : vector<8x128xf32>
    %58 = arith.mulf %57, %51 : vector<8x128xf32>
    %59 = arith.truncf %58 : vector<8x128xf32> to vector<8x128xbf16>
    %cst_38 = arith.constant dense<0.000000e+00> : vector<8x128xf32>
    %60 = tpu.matmul %59, %39, %cst_38 {dimension_numbers = #tpu.dot_dimension_numbers<[1], [0], [0], [1], [0, 0, 1, 1], [], []>} : vector<8x128xbf16>, vector<128x128xbf16>, vector<8x128xf32> -> vector<8x128xf32>
    %61 = vector.broadcast %40 : vector<1x128xf32> to vector<8x128xf32>
    %62 = arith.addf %60, %61 : vector<8x128xf32>
    %63 = arith.mulf %0, %62 : vector<8x128xf32>
    %64 = arith.addf %63, %33 : vector<8x128xf32>
    %c0_39 = arith.constant 0 : index
    %c0_40 = arith.constant 0 : index
    %65 = vector.load %arg8[%c0_39, %c0_40] : memref<8x128xf32, #tpu.memory_space<vmem>>, vector<8x128xf32>
    tpu.vector_store %arg8[%c0_39, %c0_40], %64 {strides = array<i32>} : memref<8x128xf32, #tpu.memory_space<vmem>>, vector<8x128xf32>,
    return
  }
  func.func @transform_0(%arg0: i32) -> (i32, i32) {
    %c0_i32 = arith.constant 0 : i32
    %c0_i32_0 = arith.constant 0 : i32
    return %arg0, %c0_i32 : i32, i32
  }
  func.func @transform_1(%arg0: i32) -> (i32, i32, i32) {
    %c0_i32 = arith.constant 0 : i32
    %c0_i32_0 = arith.constant 0 : i32
    %c0_i32_1 = arith.constant 0 : i32
    %c0_i32_2 = arith.constant 0 : i32
    return %c0_i32, %c0_i32_0, %c0_i32_1 : i32, i32, i32
  }
  func.func @transform_2(%arg0: i32) -> (i32, i32, i32) {
    %c0_i32 = arith.constant 0 : i32
    %c0_i32_0 = arith.constant 0 : i32
    %c0_i32_1 = arith.constant 0 : i32
    %c0_i32_2 = arith.constant 0 : i32
    return %c0_i32, %c0_i32_0, %c0_i32_1 : i32, i32, i32
  }
  func.func @transform_3(%arg0: i32) -> (i32, i32, i32) {
    %c0_i32 = arith.constant 0 : i32
    %c0_i32_0 = arith.constant 0 : i32
    %c0_i32_1 = arith.constant 0 : i32
    %c0_i32_2 = arith.constant 0 : i32
    return %c0_i32, %c0_i32_0, %c0_i32_1 : i32, i32, i32
  }
  func.func @transform_4(%arg0: i32) -> (i32, i32) {
    %c0_i32 = arith.constant 0 : i32
    %c0_i32_0 = arith.constant 0 : i32
    %c0_i32_1 = arith.constant 0 : i32
    return %c0_i32, %c0_i32_0 : i32, i32
  }
  func.func @transform_5(%arg0: i32) -> (i32, i32) {
    %c0_i32 = arith.constant 0 : i32
    %c0_i32_0 = arith.constant 0 : i32
    %c0_i32_1 = arith.constant 0 : i32
    return %c0_i32, %c0_i32_0 : i32, i32
  }
  func.func @transform_6(%arg0: i32) -> (i32, i32) {
    %c0_i32 = arith.constant 0 : i32
    %c0_i32_0 = arith.constant 0 : i32
    %c0_i32_1 = arith.constant 0 : i32
    return %c0_i32, %c0_i32_0 : i32, i32
  }
  func.func @transform_7(%arg0: i32) -> (i32, i32) {
    %c0_i32 = arith.constant 0 : i32
    %c0_i32_0 = arith.constant 0 : i32
    return %arg0, %c0_i32 : i32, i32
  }
}

</mosaic_0001>

<bundles_post_ra>
// kernel: tpu_custom_call.1
= control target key start
LH: loop header
LB: loop body
LE: loop exit
PB: predicated region body
PF: predicated region fallthrough
CT: control target
= control target key end

     0   :  { %12 = vsyncpa [#allocation3], 0  ;;  %s1302_s0 = inlined_call_operand.hbm [shape: f32[8,128], index: 0, kind: input, shape index: {}]   ;;  %s1303_s1 = inlined_call_operand.vmem [shape: bf16[2,128,128], index: 1, kind: input, shape index: {}]   ;;  %s1304_s2 = inlined_call_operand.hbm [shape: bf16[2,128,128], index: 2, kind: input, shape index: {}]   ;;  %s1305_s3 = inlined_call_operand.hbm [shape: bf16[2,128,128], index: 3, kind: input, shape index: {}]   ;;  %s1306_s4 = inlined_call_operand.vmem [shape: f32[128,4], index: 4, kind: input, shape index: {}]   ;;  %s1307_s5 = inlined_call_operand.vmem [shape: f32[4,128], index: 5, kind: input, shape index: {}]   ;;  %s1308_s6 = inlined_call_operand.vmem [shape: f32[2,128], index: 6, kind: input, shape index: {}]   ;;  %s1309_s7 = inlined_call_operand.hbm [shape: f32[8,128], index: 7, kind: output, shape index: {}]  }
   0x1   :  { %13 = vsyncpa [#allocation6], 0  ;;  %s32_s26 = sshll.u32 %s1304_s2, 4  ;;  %s33_s26 = int_to_ptr.hbm [resolvable:$true] %s32_s26 }
   0x2   :  { %14 = vsyncpa [#allocation4], 0  ;;  %s1119_s27 = smov [#allocation5]   ;;  %s20_s8 = sshll.u32 %s1302_s0, 4  ;;  %s21_s8 = int_to_ptr.hbm [resolvable:$true] %s20_s8 }
   0x3   :  { %s34_s28 = sshll.u32 %s1119_s27, 4  ;;  %s1120_s9 = smov 64   ;;  %s35_s28 = int_to_ptr.vmem [resolvable:$true] %s34_s28 }
   0x4   :  { %s1121_s10 = smov 4   ;;  %s1122_s11 = smov [#allocation2]  }
   0x5   :  { %40 = dma.hbm_to_vmem [thread:$0]  %s33_s26, 2048, %s35_s28, [#allocation6], %s1120_s9, %s1120_s9, %s1121_s10  }
   0x6   :  { %s22_s12 = sshll.u32 %s1122_s11, 4  ;;  %s45_s15 = sshll.u32 %s1305_s3, 4  ;;  %s23_s12 = int_to_ptr.vmem [resolvable:$true] %s22_s12  ;;  %s46_s15 = int_to_ptr.hbm [resolvable:$true] %s45_s15 }
   0x7   :  { %25 = dma.hbm_to_vmem [thread:$0]  %s21_s8, 128, %s23_s12, [#allocation3]  }
   0x8   :  { %s1123_s2 = smov [#allocation7]  }
   0x9   :  { %s47_s16 = sshll.u32 %s1123_s2, 4  ;;  %s48_s16 = int_to_ptr.vmem [resolvable:$true] %s47_s16 }
   0xa   :  { %53 = dma.hbm_to_vmem [thread:$0]  %s46_s15, 2048, %s48_s16, [#allocation6], %s1120_s9, %s1120_s9, %s1121_s10  }
   0xb   :  { %1113 = dma.done.wait [#allocation3], 128  }
   0xc   :  { %1114 = vsyncadd [#allocation3], 4294967168 }
   0xd   :  { %1115 = dma.done.wait [#allocation6], 4096  }
   0xe   :  { %1116 = vsyncadd [#allocation6], 4294963200  ;;  %v88_v0 = vld [vmem:[%s1306_s4 + $0x78] sm:$0xff]  ;;  %v87_v1 = vld [vmem:[%s1306_s4 + $0x70] sm:$0xff]  ;;  %vm159_vm0 = vcmask 31744   ;;  %vm187_vm1 = vcmask 1043456  }
   0xf   :  { %139 = vmatpush.msra.mxu0 %v88_v0  ;;  %v86_v2 = vld [vmem:[%s1306_s4 + $0x68] sm:$0xff]  ;;  %v85_v3 = vld [vmem:[%s1306_s4 + $0x60] sm:$0xff]  ;;  %v84_v4 = vld [vmem:[%s1306_s4 + $0x58] sm:$0xff]  ;;  %s1124_s29 = smov [#allocation8]   ;;  %s722_s10 = sshll.u32 %s1309_s7, 4  ;;  %s723_s10 = int_to_ptr.hbm [resolvable:$true] %s722_s10 }
  0x10   :  { %v83_v5 = vld [vmem:[%s1306_s4 + $0x50] sm:$0xff]  ;;  %v82_v6 = vld [vmem:[%s1306_s4 + $0x48] sm:$0xff]  ;;  %v81_v7 = vld [vmem:[%s1306_s4 + $0x40] sm:$0xff]  ;;  %s720_s30 = sshll.u32 %s1124_s29, 4  ;;  %s721_s30 = int_to_ptr.vmem [resolvable:$true] %s720_s30 }
  0x11   :  { %140 = vmatpush.msra.mxu0 %v87_v1  ;;  %v80_v8 = vld [vmem:[%s1306_s4 + $0x38] sm:$0xff]  ;;  %v79_v9 = vld [vmem:[%s1306_s4 + $0x30] sm:$0xff]  ;;  %v78_v10 = vld [vmem:[%s1306_s4 + $0x28] sm:$0xff] }
  0x12   :  { %v77_v11 = vld [vmem:[%s1306_s4 + $0x20] sm:$0xff]  ;;  %v76_v12 = vld [vmem:[%s1306_s4 + $0x18] sm:$0xff]  ;;  %v75_v13 = vld [vmem:[%s1306_s4 + $0x10] sm:$0xff] }
  0x13   :  { %141 = vmatpush.msra.mxu0 %v86_v2  ;;  %v74_v14 = vld [vmem:[%s1306_s4 + $0x8] sm:$0xff]  ;;  %v73_v15 = vld [vmem:[%s1306_s4] sm:$0xff]  ;;  %v952_v17 = vld [vmem:[%s1303_s1 + $0x38] sm:$0xff] }
  0x14   :  { %v1222_v16 = vld [vmem:[#allocation2] sm:$0xff]  ;;  %260 = vmatpush.bf16.msra.mxu2 %v952_v17  ;;  %v951_v18 = vld [vmem:[%s1303_s1 + $0x30] sm:$0xff]  ;;  %v950_v19 = vld [vmem:[%s1303_s1 + $0x28] sm:$0xff] }
  0x15   :  { %142 = vmatpush.msra.mxu0 %v85_v3  ;;  %v949_v20 = vld [vmem:[%s1303_s1 + $0x20] sm:$0xff]  ;;  %v948_v21 = vld [vmem:[%s1303_s1 + $0x18] sm:$0xff]  ;;  %v947_v22 = vld [vmem:[%s1303_s1 + $0x10] sm:$0xff]  ;;  %v211_v25 = vpack.c.bf16 %v1222_v16, %v1222_v16 }
  0x16   :  { %v946_v23 = vld [vmem:[%s1303_s1 + $0x8] sm:$0xff]  ;;  %v945_v24 = vld [vmem:[%s1303_s1] sm:$0xff]  ;;  %v959_v29 = vld [vmem:[#allocation5 + $0x30] sm:$0xff] }
  0x17   :  { %143 = vmatpush.msra.mxu0 %v84_v4  ;;  %v960_v28 = vld [vmem:[#allocation5 + $0x38] sm:$0xff]  ;;  %v958_v30 = vld [vmem:[#allocation5 + $0x28] sm:$0xff]  ;;  %v957_v31 = vld [vmem:[#allocation5 + $0x20] sm:$0xff] }
  0x18   :  { %261 = vmatpush.bf16.msra.mxu2 %v951_v18  ;;  %323 = vmatpush.bf16.msra.mxu3 %v960_v28  ;;  %v956_v32 = vld [vmem:[#allocation5 + $0x18] sm:$0xff]  ;;  %v955_v33 = vld [vmem:[#allocation5 + $0x10] sm:$0xff]  ;;  %v954_v37 = vld [vmem:[#allocation5 + $0x8] sm:$0xff] }
  0x19   :  { %144 = vmatpush.msra.mxu0 %v83_v5  ;;  %v953_v38 = vld [vmem:[#allocation5] sm:$0xff]  ;;  %v89_v45 = vld [vmem:[%s1307_s5] sm:$0xf]  ;;  %v967_v47 = vld [vmem:[#allocation7 + $0x30] sm:$0xff] }
  0x1a   :  { %733 = vmatpush.msk.msra.mxu1 %vm187_vm1, %v89_v45  ;;  %v968_v46 = vld [vmem:[#allocation7 + $0x38] sm:$0xff]  ;;  %v966_v48 = vld [vmem:[#allocation7 + $0x28] sm:$0xff]  ;;  %v965_v49 = vld [vmem:[#allocation7 + $0x20] sm:$0xff] }
  0x1b   :  { %145 = vmatpush.msra.mxu0 %v82_v6  ;;  %v964_v51 = vld [vmem:[#allocation7 + $0x18] sm:$0xff]  ;;  %v963_v52 = vld [vmem:[#allocation7 + $0x10] sm:$0xff]  ;;  %v962_v56 = vld [vmem:[#allocation7 + $0x8] sm:$0xff] }
  0x1c   :  { %262 = vmatpush.bf16.msra.mxu2 %v950_v19  ;;  %324 = vmatpush.bf16.msra.mxu3 %v959_v29  ;;  %v984_v17 = vld [vmem:[#allocation5 + $0x78] sm:$0xff]  ;;  %v983_v18 = vld [vmem:[#allocation5 + $0x70] sm:$0xff]  ;;  %v982_v19 = vld [vmem:[#allocation5 + $0x68] sm:$0xff] }
  0x1d   :  { %146 = vmatpush.msra.mxu0 %v81_v7  ;;  %388 = vmatpush.bf16.msrb.mxu1 %v968_v46  ;;  %v980_v28 = vld [vmem:[#allocation5 + $0x58] sm:$0xff]  ;;  %v979_v29 = vld [vmem:[#allocation5 + $0x50] sm:$0xff] }
  0x1e   :  { %v991_v46 = vld [vmem:[#allocation7 + $0x70] sm:$0xff] }
  0x1f   :  { %147 = vmatpush.msra.mxu0 %v80_v8 }
  0x20   :  { %263 = vmatpush.bf16.msra.mxu2 %v949_v20  ;;  %325 = vmatpush.bf16.msra.mxu3 %v958_v30  ;;  %v981_v20 = vld [vmem:[#allocation5 + $0x60] sm:$0xff]  ;;  %v978_v30 = vld [vmem:[#allocation5 + $0x48] sm:$0xff] }
  0x21   :  { %148 = vmatpush.msra.mxu0 %v79_v9  ;;  %389 = vmatpush.bf16.msrb.mxu1 %v967_v47  ;;  %v990_v47 = vld [vmem:[#allocation7 + $0x68] sm:$0xff] }
  0x23   :  { %149 = vmatpush.msra.mxu0 %v78_v10 }
  0x24   :  { %264 = vmatpush.bf16.msra.mxu2 %v948_v21  ;;  %326 = vmatpush.bf16.msra.mxu3 %v957_v31  ;;  %v999_v21 = vld [vmem:[%s1308_s6] ss:$0 sm:$0xff]  ;;  %v977_v31 = vld [vmem:[#allocation5 + $0x40] sm:$0xff] }
  0x25   :  { %150 = vmatpush.msra.mxu0 %v77_v11  ;;  %390 = vmatpush.bf16.msrb.mxu1 %v966_v48  ;;  %v989_v48 = vld [vmem:[#allocation7 + $0x60] sm:$0xff] }
  0x27   :  { %151 = vmatpush.msra.mxu0 %v76_v12 }
  0x28   :  { %265 = vmatpush.bf16.msra.mxu2 %v947_v22  ;;  %327 = vmatpush.bf16.msra.mxu3 %v956_v32 }
  0x29   :  { %152 = vmatpush.msra.mxu0 %v75_v13  ;;  %391 = vmatpush.bf16.msrb.mxu1 %v965_v49 }
  0x2b   :  { %153 = vmatpush.msra.mxu0 %v74_v14 }
  0x2c   :  { %266 = vmatpush.bf16.msra.mxu2 %v946_v23  ;;  %328 = vmatpush.bf16.msra.mxu3 %v955_v33 }
  0x2d   :  { %154 = vmatpush.msra.mxu0 %v73_v15  ;;  %392 = vmatpush.bf16.msrb.mxu1 %v964_v51  ;;  %v987_v51 = vld [vmem:[#allocation7 + $0x50] sm:$0xff] }
  0x2e   :  { %155 = vmatmul.f32.vlgmr.msra.gmra.mxu0 %v1222_v16 }
  0x2f   :  { %455 = vmatpush.msrb.mxu0 %v88_v0 }
  0x30   :  { %267 = vmatpush.bf16.msra.mxu2 %v945_v24  ;;  %329 = vmatpush.bf16.msra.mxu3 %v954_v37 }
  0x31   :  { %456 = vmatpush.msrb.mxu0 %v87_v1  ;;  %393 = vmatpush.bf16.msrb.mxu1 %v963_v52 }
  0x33   :  { %457 = vmatpush.msrb.mxu0 %v86_v2  ;;  %268 = vmatmul.bf16.vlgmr.msra.gmra.mxu2 %v211_v25 }
  0x34   :  { %330 = vmatpush.bf16.msra.mxu3 %v953_v38 }
  0x35   :  { %458 = vmatpush.msrb.mxu0 %v85_v3  ;;  %394 = vmatpush.bf16.msrb.mxu1 %v962_v56  ;;  %v961_v3 = vld [vmem:[#allocation7] sm:$0xff] }
  0x37   :  { %459 = vmatpush.msrb.mxu0 %v84_v4  ;;  %v976_v4 = vld [vmem:[%s1303_s1 + $0x78] sm:$0xff] }
  0x38   :  { %571 = vmatpush.bf16.msrb.mxu3 %v976_v4 }
  0x39   :  { %460 = vmatpush.msrb.mxu0 %v83_v5  ;;  %395 = vmatpush.bf16.msrb.mxu1 %v961_v3  ;;  %v975_v5 = vld [vmem:[%s1303_s1 + $0x70] sm:$0xff] }
  0x3b   :  { %461 = vmatpush.msrb.mxu0 %v82_v6  ;;  %v974_v6 = vld [vmem:[%s1303_s1 + $0x68] sm:$0xff] }
  0x3c   :  { %572 = vmatpush.bf16.msrb.mxu3 %v975_v5  ;;  %v1000_v5 = vld [vmem:[%s1308_s6 + $0x1] ss:$0 sm:$0xff] }
  0x3d   :  { %462 = vmatpush.msrb.mxu0 %v81_v7  ;;  %v973_v7 = vld [vmem:[%s1303_s1 + $0x60] sm:$0xff] }
  0x3f   :  { %463 = vmatpush.msrb.mxu0 %v80_v8  ;;  %v972_v8 = vld [vmem:[%s1303_s1 + $0x58] sm:$0xff] }
  0x40   :  { %573 = vmatpush.bf16.msrb.mxu3 %v974_v6 }
  0x41   :  { %464 = vmatpush.msrb.mxu0 %v79_v9  ;;  %v971_v9 = vld [vmem:[%s1303_s1 + $0x50] sm:$0xff] }
  0x43   :  { %465 = vmatpush.msrb.mxu0 %v78_v10 }
  0x44   :  { %574 = vmatpush.bf16.msrb.mxu3 %v973_v7 }
  0x45   :  { %466 = vmatpush.msrb.mxu0 %v77_v11 }
  0x47   :  { %467 = vmatpush.msrb.mxu0 %v76_v12 }
  0x48   :  { %575 = vmatpush.bf16.msrb.mxu3 %v972_v8 }
  0x49   :  { %468 = vmatpush.msrb.mxu0 %v75_v13 }
  0x4b   :  { %469 = vmatpush.msrb.mxu0 %v74_v14  ;;  %v970_v14 = vld [vmem:[%s1303_s1 + $0x48] sm:$0xff] }
  0x4c   :  { %576 = vmatpush.bf16.msrb.mxu3 %v971_v9 }
  0x4d   :  { %470 = vmatpush.msrb.mxu0 %v73_v15  ;;  %v969_v15 = vld [vmem:[%s1303_s1 + $0x40] sm:$0xff] }
  0x4f   :  { %847 = vmatpush.msk.msra.mxu0 %vm187_vm1, %v89_v45  ;;  %v992_v45 = vld [vmem:[#allocation7 + $0x78] sm:$0xff] }
  0x50   :  { %577 = vmatpush.bf16.msrb.mxu3 %v970_v14  ;;  %699 = vmatpush.bf16.msrb.mxu2 %v992_v45 }
  0x54   :  { %578 = vmatpush.bf16.msrb.mxu3 %v969_v15  ;;  %700 = vmatpush.bf16.msrb.mxu2 %v991_v46 }
  0x58   :  { %701 = vmatpush.bf16.msrb.mxu2 %v990_v47 }
  0x5c   :  { %702 = vmatpush.bf16.msrb.mxu2 %v989_v48 }
  0xab   :  { %v156_v26 = vpop.f32.mrf.mxu0 }
  0xac   :  { %v160_v27 = vsel %vm159_vm0, %v156_v26, -inf }
  0xad   :  { %161 = vmax.xlane.f32.xlu0 %v160_v27 }
  0xb6   :  { %v269_v41 = vpop.f32.mrf.mxu2 }
  0xbe   :  { %v271_v43 = vpop.f32.mrf.mxu2 }
 0x120   :  { %v162_v34 = vpop.xlane.xlu0 %161 }
 0x121   :  { %v163_v35 = vsub.f32 %v156_v26, %v162_v34 }
 0x123   :  { %v164_v36 = vmul.f32 1.442695, %v163_v35 }
 0x125   :  { %1001 = vpow2.f32 %v164_v36 }
 0x126   :  { %1003 = vtanh.f32 %v269_v41 }
 0x12b   :  { %v1002_v39 = vpop.eup %1001 }
 0x12c   :  { %v166_v40 = vsel %vm159_vm0, %v1002_v39, 0.0  ;;  %v1004_v42 = vpop.eup %1003 }
 0x12d   :  { %167 = vadd.xlane.f32.xlu0 %v166_v40  ;;  %v274_v44 = vpack.c.bf16 %v1004_v42, %v1004_v42 }
 0x12f   :  { %331 = vmatmul.bf16.vlgmr.msra.gmra.mxu3 %v274_v44 }
 0x1a0   :  { %v168_v50 = vpop.xlane.xlu0 %167 }
 0x1a1   :  { %1005 = vrcp.f32 %v168_v50  ;;  %v180_v57 = vand.u32 2147483648, %v168_v50  ;;  %v178_v59 = vand.u32 2147483647, %v168_v50  ;;  %vm174_vm3 = vweird.f32 %v168_v50 }
 0x1a3   :  { %v181_v61 = vor.u32 1.1754944e-38, %v180_v57  ;;  %vm179_vm5 = vcmp.eq.f32.partialorder %v178_v59, 8.507059e+37 }
 0x1a7   :  { %v1006_v53 = vpop.eup %1005 }
 0x1a8   :  { %v170_v54 = vmul.f32 %v1006_v53, %v168_v50  ;;  %vm175_vm2 = vweird.f32 %v1006_v53  ;;  %v988_v50 = vld [vmem:[#allocation7 + $0x58] sm:$0xff] }
 0x1a9   :  { %vm176_vm4 = vmor %vm174_vm3, %vm175_vm2  ;;  %703 = vmatpush.bf16.msrb.mxu2 %v988_v50 }
 0x1aa   :  { %v171_v55 = vsub.f32 1.0, %v170_v54 }
 0x1ac   :  { %v172_v58 = vmul.f32 %v1006_v53, %v171_v55  ;;  %v986_v55 = vld [vmem:[#allocation7 + $0x48] sm:$0xff] }
 0x1ad   :  { %704 = vmatpush.bf16.msrb.mxu2 %v987_v51 }
 0x1ae   :  { %v173_v60 = vadd.f32 %v1006_v53, %v172_v58 }
 0x1b0   :  { %v177_v62 = vsel %vm176_vm4, %v1006_v53, %v173_v60 }
 0x1b1   :  { %v182_v63 = vsel %vm179_vm5, %v181_v61, %v177_v62  ;;  %705 = vmatpush.bf16.msrb.mxu2 %v986_v55 }
 0x1b2   :  { %v183_v0 = vmul.f32 %v1002_v39, %v182_v63  ;;  %v332_v1 = vpop.f32.mrf.mxu3 }
 0x1b3   :  { %1007 = vtanh.f32 %v332_v1 }
 0x1b4   :  { %734 = vmatmul.msk.f32.vlgmr.msra.gmra.mxu1 %vm159_vm0, %v183_v0  ;;  %v985_v0 = vld [vmem:[#allocation7 + $0x40] sm:$0xff] }
 0x1b5   :  { %634 = vmatpush.bf16.msra.mxu1 %v984_v17  ;;  %706 = vmatpush.bf16.msrb.mxu2 %v985_v0 }
 0x1b9   :  { %v1008_v10 = vpop.eup %1007  ;;  %635 = vmatpush.bf16.msra.mxu1 %v983_v18 }
 0x1ba   :  { %v334_v2 = vpop.f32.mrf.mxu3 }
 0x1bd   :  { %636 = vmatpush.bf16.msra.mxu1 %v982_v19 }
 0x1c1   :  { %637 = vmatpush.bf16.msra.mxu1 %v981_v20 }
 0x1c5   :  { %638 = vmatpush.bf16.msra.mxu1 %v980_v28 }
 0x1c9   :  { %639 = vmatpush.bf16.msra.mxu1 %v979_v29 }
 0x1cd   :  { %640 = vmatpush.bf16.msra.mxu1 %v978_v30 }
 0x1d1   :  { %641 = vmatpush.bf16.msra.mxu1 %v977_v31 }
 0x231   :  { %v208_v11 = vpop.f32.mrf.mxu1 }
 0x232   :  { %v337_v12 = vmul.f32 %v1008_v10, %v208_v11 }
 0x234   :  { %v338_v13 = vpack.c.bf16 %v337_v12, %v337_v12 }
 0x236   :  { %396 = vmatmul.bf16.vlgmr.msrb.gmra.mxu1 %v338_v13 }
 0x2b3   :  { %v397_v22 = vpop.f32.mrf.mxu1 }
 0x2b4   :  { %v398_v23 = vadd.f32 %v999_v21, %v397_v22 }
 0x2b6   :  { %v401_v24 = vmul.f32 %v398_v23, %v1222_v16 }
 0x2b8   :  { %v1286_v25 = vadd.f32 %v401_v24, %v1222_v16 }
 0x2ba   :  { %471 = vmatmul.f32.vlgmr.msrb.gmra.mxu0 %v1286_v25  ;;  %v522_v26 = vpack.c.bf16 %v1286_v25, %v1286_v25 }
 0x2bb   :  { %v399_v27 = vpop.f32.mrf.mxu1 }
 0x2bc   :  { %579 = vmatmul.bf16.vlgmr.msrb.gmra.mxu3 %v522_v26 }
 0x337   :  { %v472_v32 = vpop.f32.mrf.mxu0 }
 0x338   :  { %v475_v33 = vsel %vm159_vm0, %v472_v32, -inf }
 0x339   :  { %476 = vmax.xlane.f32.xlu1 %v475_v33 }
 0x33f   :  { %v580_v34 = vpop.f32.mrf.mxu3 }
 0x340   :  { %1009 = vtanh.f32 %v580_v34 }
 0x346   :  { %v1010_v35 = vpop.eup %1009 }
 0x347   :  { %v585_v36 = vpack.c.bf16 %v1010_v35, %v1010_v35  ;;  %v582_v37 = vpop.f32.mrf.mxu3 }
 0x349   :  { %642 = vmatmul.bf16.vlgmr.msra.gmra.mxu1 %v585_v36 }
 0x3ac   :  { %v477_v38 = vpop.xlane.xlu1 %476 }
 0x3ad   :  { %v478_v39 = vsub.f32 %v472_v32, %v477_v38 }
 0x3af   :  { %v479_v40 = vmul.f32 1.442695, %v478_v39 }
 0x3b1   :  { %1011 = vpow2.f32 %v479_v40 }
 0x3b7   :  { %v1012_v41 = vpop.eup %1011 }
 0x3b8   :  { %v481_v42 = vsel %vm159_vm0, %v1012_v41, 0.0 }
 0x3b9   :  { %482 = vadd.xlane.f32.xlu1 %v481_v42 }
 0x3c6   :  { %v643_v43 = vpop.f32.mrf.mxu1 }
 0x3ce   :  { %v645_v44 = vpop.f32.mrf.mxu1 }
 0x42c   :  { %v483_v49 = vpop.xlane.xlu1 %482 }
 0x42d   :  { %1013 = vrcp.f32 %v483_v49  ;;  %v495_v56 = vand.u32 2147483648, %v483_v49  ;;  %v493_v58 = vand.u32 2147483647, %v483_v49  ;;  %vm489_vm7 = vweird.f32 %v483_v49 }
 0x42e   :  { %1015 = vtanh.f32 %v643_v43 }
 0x42f   :  { %v496_v60 = vor.u32 1.1754944e-38, %v495_v56  ;;  %vm494_vm9 = vcmp.eq.f32.partialorder %v493_v58, 8.507059e+37 }
 0x433   :  { %v1014_v52 = vpop.eup %1013 }
 0x434   :  { %v485_v53 = vmul.f32 %v1014_v52, %v483_v49  ;;  %vm490_vm6 = vweird.f32 %v1014_v52  ;;  %v1016_v1 = vpop.eup %1015 }
 0x435   :  { %vm491_vm8 = vmor %vm489_vm7, %vm490_vm6 }
 0x436   :  { %v486_v54 = vsub.f32 1.0, %v485_v53 }
 0x438   :  { %v487_v57 = vmul.f32 %v1014_v52, %v486_v54 }
 0x43a   :  { %v488_v59 = vadd.f32 %v1014_v52, %v487_v57 }
 0x43c   :  { %v492_v61 = vsel %vm491_vm8, %v1014_v52, %v488_v59 }
 0x43d   :  { %v497_v62 = vsel %vm494_vm9, %v496_v60, %v492_v61 }
 0x43e   :  { %v498_v63 = vmul.f32 %v1012_v41, %v497_v62 }
 0x440   :  { %848 = vmatmul.msk.f32.vlgmr.msra.gmra.mxu0 %vm159_vm0, %v498_v63 }
 0x4bd   :  { %v519_v2 = vpop.f32.mrf.mxu0 }
 0x4be   :  { %v648_v3 = vmul.f32 %v1016_v1, %v519_v2 }
 0x4c0   :  { %v649_v4 = vpack.c.bf16 %v648_v3, %v648_v3 }
 0x4c2   :  { %707 = vmatmul.bf16.vlgmr.msrb.gmra.mxu2 %v649_v4 }
 0x545   :  { %v708_v6 = vpop.f32.mrf.mxu2 }
 0x546   :  { %v709_v7 = vadd.f32 %v1000_v5, %v708_v6 }
 0x548   :  { %v712_v8 = vmul.f32 %v709_v7, %v1222_v16 }
 0x54a   :  { %v713_v9 = vadd.f32 %v712_v8, %v1286_v25 }
 0x54c   :  { %714 = vst [vmem:[#allocation8] sm:$0xff] %v713_v9 }
 0x54d   :  { %v710_v10 = vpop.f32.mrf.mxu2  ;;  %725 = dma.vmem_to_hbm [thread:$0]  %s721_s30, 128, %s723_s10, [#allocation4]  }
 0x54e   :  { %1117 = dma.done.wait [#allocation4], 128  }
 0x54f   :  { %1118 = vsyncadd [#allocation4], 4294967168 }
 0x550   :  { %730 = vsyncpa [#allocation3], 1 }
 0x551   :  { %731 = vsyncpa [#allocation6], 1 }
 0x552   :  { %732 = vsyncpa [#allocation4], 1 }

</bundles_post_ra>
